<compile_context>
chip_gen: v5e
topology: v5e:2x2
jax: 0.10.0
libtpu: 0.0.40
codegen_flags: <defaults>
</compile_context>

<pallas_src>
import jax
import jax.numpy as jnp
from jax import lax
from jax.experimental import pallas as pl
from jax.experimental.pallas import tpu as pltpu

# ------------------------- model / problem sizes -------------------------
B = 4            # batch
K = 8            # length of interacted_items sequence
D = 32           # latent_dim
NI = 64          # n_item  (embedding table has NI+1 rows, row 0 = padding id)
C = 64           # codebook_size
PAD = 0          # pad_ind

assert C == 2 * D and D % 8 == 0, "demo packing assumes C == 2*D and 8-aligned D"

# ---- single packed-parameter slab: 128 lanes wide, every matmul operand at lane 0,
# ---- all section row-starts multiples of 8 (unused lanes are zero padding) --------
TABLE_ROWS = 128                   # item table padded 65 -> 128 rows; also the lane
                                   # width of the one-hot selection matrix.
ROW_W1 = 0                         # (D, 2D)          lanes [0, 2D)
ROW_B1 = ROW_W1 + D                # (1, 2D)
ROW_CB = ROW_B1 + 8                # (D, C) codebook  lanes [0, C)
ROW_CBN = ROW_CB + D               # (1, C) ||e_j||^2 (precomputed)
ROW_TABLE = ROW_CBN + 8            # (TABLE_ROWS, D)  item-embedding table
ROW_W2 = ROW_TABLE + TABLE_ROWS    # (2D, D)
ROW_B2 = ROW_W2 + 2 * D            # (1, D)
ROW_CBT = ROW_B2 + 8               # (C, D) codebook^T (both orientations stored)
R_SLAB = ROW_CBT + C               # total rows (344)
SLAB_LANES = 128

PREC = lax.Precision.HIGHEST       # tiny matmuls; keep f32 parity with torch ref


def domain_kernel(ids_ref, slab_ref, out_ref):
    """ids_ref  : (3B, K) int32 VMEM.  rows [0,B)  = interacted items (pad slots = -1)
                                        rows [B,2B) = pos index in col 0, -1 elsewhere
                                        rows [2B,3B)= neg index in col 0, -1 elsewhere
       slab_ref : (R_SLAB, 128) f32 packed parameters (see layout above)
       out_ref  : (B, 4D) f32 packed [quant | user | pos | neg]"""
    f32 = jnp.float32

    # ---- vectorized one-hot gather: build (3B, TABLE_ROWS) selection matrix ----
    ids = ids_ref[...]                                              # (3B, K) int32
    rcol = lax.broadcasted_iota(jnp.int32, (3 * B, TABLE_ROWS), 1)
    w_sel = jnp.zeros((3 * B, TABLE_ROWS), f32)
    for k in range(K):                                              # K static VPU compares
        w_sel = w_sel + (rcol == ids[:, k:k + 1]).astype(f32)       # -1 sentinel never hits

    # one MXU matmul performs all B*K mean-gathers plus the pos/neg lookups
    table = slab_ref[pl.ds(ROW_TABLE, TABLE_ROWS), pl.ds(0, D)]     # (128, D)
    gathered = jnp.dot(w_sel, table, preferred_element_type=f32, precision=PREC)  # (3B, D)

    # masked point-wise mean; count(non-pad) == lane-sum of the weight rows
    cnt = jnp.sum(w_sel[0:B, :], axis=1, keepdims=True)             # (B, 1)
    # torch divides by sum(mask); the clamp only guards an all-padding row (torch -> NaN)
    mean_emb = gathered[0:B, :] / jnp.maximum(cnt, 1.0)             # (B, D)
    pos_emb = gathered[B:2 * B, :]                                  # (B, D)
    neg_emb = gathered[2 * B:3 * B, :]                              # (B, D)

    # ---- self.map : Linear(D, 2D) -> ReLU -> Linear(2D, D) ----
    w1 = slab_ref[pl.ds(ROW_W1, D), pl.ds(0, 2 * D)]                # (D, 2D)
    b1 = slab_ref[pl.ds(ROW_B1, 1), pl.ds(0, 2 * D)]                # (1, 2D)
    w2 = slab_ref[pl.ds(ROW_W2, 2 * D), pl.ds(0, D)]                # (2D, D)
    b2 = slab_ref[pl.ds(ROW_B2, 1), pl.ds(0, D)]                    # (1, D)
    h = jnp.maximum(
        jnp.dot(mean_emb, w1, preferred_element_type=f32, precision=PREC) + b1, 0.0)
    user = jnp.dot(h, w2, preferred_element_type=f32, precision=PREC) + b2     # (B, D)

    # ---- Quantize: nearest codebook vector (eval / straight-through forward value) ----
    cb = slab_ref[pl.ds(ROW_CB, D), pl.ds(0, C)]                    # (D, C)
    cbn = slab_ref[pl.ds(ROW_CBN, 1), pl.ds(0, C)]                  # (1, C) ||e_j||^2
    cbt = slab_ref[pl.ds(ROW_CBT, C), pl.ds(0, D)]                  # (C, D)
    # ||u||^2 term omitted: constant per row, argmin-invariant.
    scores = cbn - 2.0 * jnp.dot(user, cb, preferred_element_type=f32, precision=PREC)
    min_s = jnp.min(scores, axis=1, keepdims=True)
    ccol = lax.broadcasted_iota(jnp.int32, (B, C), 1)
    ind = jnp.min(jnp.where(scores <= min_s, ccol, C), axis=1, keepdims=True)   # first argmin
    one_hot = (ccol == ind).astype(f32)                             # (B, C)
    quant = jnp.dot(one_hot, cbt, preferred_element_type=f32, precision=PREC)   # (B, D)

    # ---- single lane-dense packed writeback: (B, 4D) = one unmasked store ----
    out_ref[...] = jnp.concatenate([quant, user, pos_emb, neg_emb], axis=1)


def pack_params(params):
    """Pack the 9 torch parameters into ONE lane-dense (R_SLAB, 128) f32 slab.
    Called ONCE at init (outside the per-step jit) and reused every step."""
    cb = params["codebook"]                                   # (D, C) as in VQ-VAE ref impl
    cbn = jnp.sum(cb * cb, axis=0, keepdims=True)             # (1, C) codebook self-norms
    slab = jnp.zeros((R_SLAB, SLAB_LANES), jnp.float32)
    slab = slab.at[ROW_W1:ROW_W1 + D, 0:2 * D].set(params["w1"])
    slab = slab.at[ROW_B1:ROW_B1 + 1, 0:2 * D].set(params["b1"])
    slab = slab.at[ROW_CB:ROW_CB + D, 0:C].set(cb)
    slab = slab.at[ROW_CBN:ROW_CBN + 1, 0:C].set(cbn)
    slab = slab.at[ROW_TABLE:ROW_TABLE + NI + 1, 0:D].set(params["item_embed"])
    slab = slab.at[ROW_W2:ROW_W2 + 2 * D, 0:D].set(params["w2"])
    slab = slab.at[ROW_B2:ROW_B2 + 1, 0:D].set(params["b2"])
    slab = slab.at[ROW_CBT:ROW_CBT + C, 0:D].set(cb.T)
    return slab


def domain_model_forward(slab, user_id, interacted_items, pos, neg):
    """Returns (quant_user, pos_item, neg_item, diff, user_embed) like the torch module.
    `slab` is the pre-packed parameter slab from pack_params (packed once at init)."""
    del user_id                               # unused in the 'item' user-embedding branch
    items = interacted_items.reshape(B, K).astype(jnp.int32)
    # -1 sentinel never matches a table column => zero selection weight
    items_sel = jnp.where(items == PAD, -1, items)
    pos_sel = jnp.full((B, K), -1, jnp.int32).at[:, 0].set(pos.reshape(B).astype(jnp.int32))
    neg_sel = jnp.full((B, K), -1, jnp.int32).at[:, 0].set(neg.reshape(B).astype(jnp.int32))
    ids = jnp.concatenate([items_sel, pos_sel, neg_sel], axis=0)    # (3B, K) int32, ~384 B

    vmem = pl.BlockSpec(memory_space=pltpu.MemorySpace.VMEM)
    packed = pl.pallas_call(
        domain_kernel,
        out_shape=jax.ShapeDtypeStruct((B, 4 * D), jnp.float32),
        in_specs=[vmem, vmem],
        out_specs=vmem,
    )(ids, slab)

    quant_user = packed[:, 0:D]
    user_embed = packed[:, D:2 * D]
    pos_item = packed[:, 2 * D:3 * D]
    neg_item = packed[:, 3 * D:4 * D]
    # Quantize.diff = mean((quant.detach() - input)^2): tiny scalar, computed outside
    diff = jnp.mean((quant_user - user_embed) ** 2)
    return quant_user, pos_item, neg_item, diff, user_embed


def init_params(key):
    k = jax.random.split(key, 6)
    return {
        # nn.Embedding(n_item+1, latent_dim), init normal std=0.01
        "item_embed": 0.01 * jax.random.normal(k[0], (NI + 1, D), jnp.float32),
        # self.map = Linear(D, 2D) -> ReLU -> Linear(2D, D)   (weights stored (in, out))
        "w1": 0.1 * jax.random.normal(k[1], (D, 2 * D), jnp.float32),
        "b1": 0.1 * jax.random.normal(k[2], (1, 2 * D), jnp.float32),
        "w2": 0.1 * jax.random.normal(k[3], (2 * D, D), jnp.float32),
        "b2": 0.1 * jax.random.normal(k[4], (1, D), jnp.float32),
        # Quantize codebook, stored [dim, n_embed] as in the VQ-VAE reference impl
        "codebook": jax.random.normal(k[5], (D, C), jnp.float32),
    }


if __name__ == "__main__":
    key = jax.random.PRNGKey(0)
    pkey, dkey1, dkey2, dkey3 = jax.random.split(key, 4)
    params = init_params(pkey)
    slab = jax.block_until_ready(pack_params(params))   # packed ONCE, reused per step

    user_id = jax.random.randint(dkey1, (B, 1), 0, 8, jnp.int32)
    # interacted items in [1, NI]; zero out a few entries as padding
    interacted_items = jax.random.randint(dkey2, (B, K), 1, NI + 1, jnp.int32)
    pad_mask = jax.random.bernoulli(dkey3, 0.25, (B, K))
    interacted_items = jnp.where(pad_mask, 0, interacted_items)
    # guarantee at least one non-pad item per row (matches sane torch inputs)
    interacted_items = interacted_items.at[:, 0].set(
        jnp.maximum(interacted_items[:, 0], 1))
    pos = jax.random.randint(jax.random.PRNGKey(7), (B,), 1, NI + 1, jnp.int32)
    neg = jax.random.randint(jax.random.PRNGKey(11), (B,), 1, NI + 1, jnp.int32)

    fwd = jax.jit(domain_model_forward)
    out = jax.block_until_ready(fwd(slab, user_id, interacted_items, pos, neg))
    quant_user, pos_item, neg_item, diff, user_embed = out
    assert quant_user.shape == (B, D) and user_embed.shape == (B, D)
    assert pos_item.shape == (B, D) and neg_item.shape == (B, D)
    assert diff.shape == ()
    assert bool(jnp.all(jnp.isfinite(quant_user))) and bool(jnp.isfinite(diff))
    print("KERNEL_OK")
</pallas_src>

<mosaic_0001>
module attributes {stable_mosaic.version = 11 : i64} {
  func.func @domain_kernel(%arg0: memref<12x8xi32, #tpu.memory_space<vmem>>, %arg1: memref<344x128xf32, #tpu.memory_space<vmem>>, %arg2: memref<4x128xf32, #tpu.memory_space<vmem>>) attributes {dimension_semantics = [], scalar_prefetch = 0 : i64, scratch_operands = 0 : i64, tpu.core_type = #tpu.core_type<tc>} {
    %c0 = arith.constant 0 : index
    %c0_0 = arith.constant 0 : index
    %0 = vector.load %arg0[%c0, %c0_0] : memref<12x8xi32, #tpu.memory_space<vmem>>, vector<12x8xi32>
    %1 = tpu.iota {dimensions = array<i32: 1>} : vector<12x128xi32>
    %cst = arith.constant 0.000000e+00 : f32
    %2 = vector.broadcast %cst : f32 to vector<12x128xf32>
    %3 = vector.extract_strided_slice %0 {offsets = [0, 0], sizes = [12, 1], strides = [1, 1]} : vector<12x8xi32> to vector<12x1xi32>
    %4 = vector.broadcast %3 : vector<12x1xi32> to vector<12x128xi32>
    %5 = arith.cmpi eq, %1, %4 : vector<12x128xi32>
    %6 = arith.extui %5 : vector<12x128xi1> to vector<12x128xi32>
    %7 = arith.sitofp %6 : vector<12x128xi32> to vector<12x128xf32>
    %8 = arith.addf %2, %7 : vector<12x128xf32>
    %9 = vector.extract_strided_slice %0 {offsets = [0, 1], sizes = [12, 1], strides = [1, 1]} : vector<12x8xi32> to vector<12x1xi32>
    %10 = vector.broadcast %9 : vector<12x1xi32> to vector<12x128xi32>
    %11 = arith.cmpi eq, %1, %10 : vector<12x128xi32>
    %12 = arith.extui %11 : vector<12x128xi1> to vector<12x128xi32>
    %13 = arith.sitofp %12 : vector<12x128xi32> to vector<12x128xf32>
    %14 = arith.addf %8, %13 : vector<12x128xf32>
    %15 = vector.extract_strided_slice %0 {offsets = [0, 2], sizes = [12, 1], strides = [1, 1]} : vector<12x8xi32> to vector<12x1xi32>
    %16 = vector.broadcast %15 : vector<12x1xi32> to vector<12x128xi32>
    %17 = arith.cmpi eq, %1, %16 : vector<12x128xi32>
    %18 = arith.extui %17 : vector<12x128xi1> to vector<12x128xi32>
    %19 = arith.sitofp %18 : vector<12x128xi32> to vector<12x128xf32>
    %20 = arith.addf %14, %19 : vector<12x128xf32>
    %21 = vector.extract_strided_slice %0 {offsets = [0, 3], sizes = [12, 1], strides = [1, 1]} : vector<12x8xi32> to vector<12x1xi32>
    %22 = vector.broadcast %21 : vector<12x1xi32> to vector<12x128xi32>
    %23 = arith.cmpi eq, %1, %22 : vector<12x128xi32>
    %24 = arith.extui %23 : vector<12x128xi1> to vector<12x128xi32>
    %25 = arith.sitofp %24 : vector<12x128xi32> to vector<12x128xf32>
    %26 = arith.addf %20, %25 : vector<12x128xf32>
    %27 = vector.extract_strided_slice %0 {offsets = [0, 4], sizes = [12, 1], strides = [1, 1]} : vector<12x8xi32> to vector<12x1xi32>
    %28 = vector.broadcast %27 : vector<12x1xi32> to vector<12x128xi32>
    %29 = arith.cmpi eq, %1, %28 : vector<12x128xi32>
    %30 = arith.extui %29 : vector<12x128xi1> to vector<12x128xi32>
    %31 = arith.sitofp %30 : vector<12x128xi32> to vector<12x128xf32>
    %32 = arith.addf %26, %31 : vector<12x128xf32>
    %33 = vector.extract_strided_slice %0 {offsets = [0, 5], sizes = [12, 1], strides = [1, 1]} : vector<12x8xi32> to vector<12x1xi32>
    %34 = vector.broadcast %33 : vector<12x1xi32> to vector<12x128xi32>
    %35 = arith.cmpi eq, %1, %34 : vector<12x128xi32>
    %36 = arith.extui %35 : vector<12x128xi1> to vector<12x128xi32>
    %37 = arith.sitofp %36 : vector<12x128xi32> to vector<12x128xf32>
    %38 = arith.addf %32, %37 : vector<12x128xf32>
    %39 = vector.extract_strided_slice %0 {offsets = [0, 6], sizes = [12, 1], strides = [1, 1]} : vector<12x8xi32> to vector<12x1xi32>
    %40 = vector.broadcast %39 : vector<12x1xi32> to vector<12x128xi32>
    %41 = arith.cmpi eq, %1, %40 : vector<12x128xi32>
    %42 = arith.extui %41 : vector<12x128xi1> to vector<12x128xi32>
    %43 = arith.sitofp %42 : vector<12x128xi32> to vector<12x128xf32>
    %44 = arith.addf %38, %43 : vector<12x128xf32>
    %45 = vector.extract_strided_slice %0 {offsets = [0, 7], sizes = [12, 1], strides = [1, 1]} : vector<12x8xi32> to vector<12x1xi32>
    %46 = vector.broadcast %45 : vector<12x1xi32> to vector<12x128xi32>
    %47 = arith.cmpi eq, %1, %46 : vector<12x128xi32>
    %48 = arith.extui %47 : vector<12x128xi1> to vector<12x128xi32>
    %49 = arith.sitofp %48 : vector<12x128xi32> to vector<12x128xf32>
    %50 = arith.addf %44, %49 : vector<12x128xf32>
    %c80 = arith.constant 80 : index
    %c0_1 = arith.constant 0 : index
    %51 = vector.load %arg1[%c80, %c0_1] : memref<344x128xf32, #tpu.memory_space<vmem>>, vector<128x32xf32>
    %cst_2 = arith.constant dense<0.000000e+00> : vector<12x32xf32>
    %52 = tpu.matmul %50, %51, %cst_2 {dimension_numbers = #tpu.dot_dimension_numbers<[1], [0], [0], [1], [0, 0, 1, 1], [], []>, precision = #tpu.contract_precision<fp32>} : vector<12x128xf32>, vector<128x32xf32>, vector<12x32xf32> -> vector<12x32xf32>
    %53 = vector.extract_strided_slice %50 {offsets = [0, 0], sizes = [4, 128], strides = [1, 1]} : vector<12x128xf32> to vector<4x128xf32>
    %cst_3 = arith.constant dense<0.000000e+00> : vector<4xf32>
    %54 = vector.multi_reduction <add>, %53, %cst_3 [1] : vector<4x128xf32> to vector<4xf32>
    %55 = vector.shape_cast %54 : vector<4xf32> to vector<4x1xf32>
    %56 = vector.extract_strided_slice %52 {offsets = [0, 0], sizes = [4, 32], strides = [1, 1]} : vector<12x32xf32> to vector<4x32xf32>
    %cst_4 = arith.constant 1.000000e+00 : f32
    %57 = vector.broadcast %cst_4 : f32 to vector<4x1xf32>
    %58 = arith.maximumf %55, %57 : vector<4x1xf32>
    %59 = vector.broadcast %58 : vector<4x1xf32> to vector<4x32xf32>
    %60 = arith.divf %56, %59 : vector<4x32xf32>
    %61 = vector.extract_strided_slice %52 {offsets = [4, 0], sizes = [4, 32], strides = [1, 1]} : vector<12x32xf32> to vector<4x32xf32>
    %62 = vector.extract_strided_slice %52 {offsets = [8, 0], sizes = [4, 32], strides = [1, 1]} : vector<12x32xf32> to vector<4x32xf32>
    %c0_5 = arith.constant 0 : index
    %c0_6 = arith.constant 0 : index
    %63 = vector.load %arg1[%c0_5, %c0_6] : memref<344x128xf32, #tpu.memory_space<vmem>>, vector<32x64xf32>
    %c32 = arith.constant 32 : index
    %c0_7 = arith.constant 0 : index
    %64 = vector.load %arg1[%c32, %c0_7] : memref<344x128xf32, #tpu.memory_space<vmem>>, vector<1x64xf32>
    %c208 = arith.constant 208 : index
    %c0_8 = arith.constant 0 : index
    %65 = vector.load %arg1[%c208, %c0_8] : memref<344x128xf32, #tpu.memory_space<vmem>>, vector<64x32xf32>
    %c272 = arith.constant 272 : index
    %c0_9 = arith.constant 0 : index
    %66 = vector.load %arg1[%c272, %c0_9] : memref<344x128xf32, #tpu.memory_space<vmem>>, vector<1x32xf32>
    %cst_10 = arith.constant dense<0.000000e+00> : vector<4x64xf32>
    %67 = tpu.matmul %60, %63, %cst_10 {dimension_numbers = #tpu.dot_dimension_numbers<[1], [0], [0], [1], [0, 0, 1, 1], [], []>, precision = #tpu.contract_precision<fp32>} : vector<4x32xf32>, vector<32x64xf32>, vector<4x64xf32> -> vector<4x64xf32>
    %68 = vector.broadcast %64 : vector<1x64xf32> to vector<4x64xf32>
    %69 = arith.addf %67, %68 : vector<4x64xf32>
    %cst_11 = arith.constant 0.000000e+00 : f32
    %70 = vector.broadcast %cst_11 : f32 to vector<4x64xf32>
    %71 = arith.maximumf %69, %70 : vector<4x64xf32>
    %cst_12 = arith.constant dense<0.000000e+00> : vector<4x32xf32>
    %72 = tpu.matmul %71, %65, %cst_12 {dimension_numbers = #tpu.dot_dimension_numbers<[1], [0], [0], [1], [0, 0, 1, 1], [], []>, precision = #tpu.contract_precision<fp32>} : vector<4x64xf32>, vector<64x32xf32>, vector<4x32xf32> -> vector<4x32xf32>
    %73 = vector.broadcast %66 : vector<1x32xf32> to vector<4x32xf32>
    %74 = arith.addf %72, %73 : vector<4x32xf32>
    %c40 = arith.constant 40 : index
    %c0_13 = arith.constant 0 : index
    %75 = vector.load %arg1[%c40, %c0_13] : memref<344x128xf32, #tpu.memory_space<vmem>>, vector<32x64xf32>
    %c72 = arith.constant 72 : index
    %c0_14 = arith.constant 0 : index
    %76 = vector.load %arg1[%c72, %c0_14] : memref<344x128xf32, #tpu.memory_space<vmem>>, vector<1x64xf32>
    %c280 = arith.constant 280 : index
    %c0_15 = arith.constant 0 : index
    %77 = vector.load %arg1[%c280, %c0_15] : memref<344x128xf32, #tpu.memory_space<vmem>>, vector<64x32xf32>
    %cst_16 = arith.constant dense<0.000000e+00> : vector<4x64xf32>
    %78 = tpu.matmul %74, %75, %cst_16 {dimension_numbers = #tpu.dot_dimension_numbers<[1], [0], [0], [1], [0, 0, 1, 1], [], []>, precision = #tpu.contract_precision<fp32>} : vector<4x32xf32>, vector<32x64xf32>, vector<4x64xf32> -> vector<4x64xf32>
    %cst_17 = arith.constant 2.000000e+00 : f32
    %79 = vector.broadcast %cst_17 : f32 to vector<4x64xf32>
    %80 = arith.mulf %79, %78 : vector<4x64xf32>
    %81 = vector.broadcast %76 : vector<1x64xf32> to vector<4x64xf32>
    %82 = arith.subf %81, %80 : vector<4x64xf32>
    %cst_18 = arith.constant dense<0x7F800000> : vector<4xf32>
    %83 = vector.multi_reduction <minimumf>, %82, %cst_18 [1] : vector<4x64xf32> to vector<4xf32>
    %84 = vector.shape_cast %83 : vector<4xf32> to vector<4x1xf32>
    %85 = tpu.iota {dimensions = array<i32: 1>} : vector<4x64xi32>
    %86 = vector.broadcast %84 : vector<4x1xf32> to vector<4x64xf32>
    %87 = arith.cmpf ole, %82, %86 : vector<4x64xf32>
    %c64_i32 = arith.constant 64 : i32
    %88 = vector.broadcast %c64_i32 : i32 to vector<4x64xi32>
    %89 = arith.select %87, %85, %88 : vector<4x64xi1>, vector<4x64xi32>
    %cst_19 = arith.constant dense<2147483647> : vector<4xi32>
    %90 = vector.multi_reduction <minsi>, %89, %cst_19 [1] : vector<4x64xi32> to vector<4xi32>
    %91 = vector.shape_cast %90 : vector<4xi32> to vector<4x1xi32>
    %92 = vector.broadcast %91 : vector<4x1xi32> to vector<4x64xi32>
    %93 = arith.cmpi eq, %85, %92 : vector<4x64xi32>
    %94 = arith.extui %93 : vector<4x64xi1> to vector<4x64xi32>
    %95 = arith.sitofp %94 : vector<4x64xi32> to vector<4x64xf32>
    %cst_20 = arith.constant dense<0.000000e+00> : vector<4x32xf32>
    %96 = tpu.matmul %95, %77, %cst_20 {dimension_numbers = #tpu.dot_dimension_numbers<[1], [0], [0], [1], [0, 0, 1, 1], [], []>, precision = #tpu.contract_precision<fp32>} : vector<4x64xf32>, vector<64x32xf32>, vector<4x32xf32> -> vector<4x32xf32>
    %97 = tpu.concatenate %96, %74, %61, %62 in 1 : vector<4x32xf32>, vector<4x32xf32>, vector<4x32xf32>, vector<4x32xf32> -> vector<4x128xf32>
    %c0_21 = arith.constant 0 : index
    %c0_22 = arith.constant 0 : index
    %98 = vector.load %arg2[%c0_21, %c0_22] : memref<4x128xf32, #tpu.memory_space<vmem>>, vector<4x128xf32>
    tpu.vector_store %arg2[%c0_21, %c0_22], %97 {strides = array<i32>} : memref<4x128xf32, #tpu.memory_space<vmem>>, vector<4x128xf32>,
    return
  }
}

</mosaic_0001>

<bundles_post_ra>
// kernel: domain_model_forward.1
= control target key start
LH: loop header
LB: loop body
LE: loop exit
PB: predicated region body
PF: predicated region fallthrough
CT: control target
= control target key end

     0   :  { %7 = vsyncpa [#allocation3], 0  ;;  %s1571_s12 = smov [#allocation2]   ;;  %s1572_s14 = smov 128   ;;  %s2090_s0 = inlined_call_operand.vmem [shape: s32[12,8], index: 0, kind: input, shape index: {}]   ;;  %s2091_s1 = inlined_call_operand.hbm [shape: f32[344,128], index: 1, kind: input, shape index: {}]   ;;  %s2092_s2 = inlined_call_operand.vmem [shape: f32[4,128], index: 2, kind: output, shape index: {}]  }
   0x1   :  { %s14_s11 = sshll.u32 %s2091_s1, 4  ;;  %s16_s13 = sshll.u32 %s1571_s12, 4  ;;  %s15_s11 = int_to_ptr.hbm [resolvable:$true] %s14_s11  ;;  %s17_s13 = int_to_ptr.vmem [resolvable:$true] %s16_s13 }
   0x2   :  { %s1573_s15 = smov 8  }
   0x3   :  { %22 = dma.hbm_to_vmem [thread:$0]  %s15_s11, 5504, %s17_s13, [#allocation3], %s1572_s14, %s1572_s14, %s1573_s15  }
   0x4   :  { %1569 = dma.done.wait [#allocation3], 5504  }
   0x5   :  { %1570 = vsyncadd [#allocation3], 4294961792  ;;  %v1574_v0 = vmov 2   ;;  %v1575_v1 = vmov 0   ;;  %v1576_v2 = vmov 4   ;;  %v27_v3 = vld [vmem:[%s2090_s0] sm:$0xff] }
   0x6   :  { %1525 = vset.pattern.permute.xlu1 %v1574_v0  ;;  %1523 = vset.pattern.permute.xlu0 %v1575_v1  ;;  %v1577_v4 = vmov 3   ;;  %v1578_v5 = vmov 1   ;;  %v28_v6 = vld [vmem:[%s2090_s0 + $0x8] sm:$0xf]  ;;  %v1579_v7 = vmov 5   ;;  %v1580_v8 = vmov 6  }
   0x7   :  { %1527 = vset.pattern.permute.xlu2 %v1576_v2  ;;  %60 = vperm.xlu1 %1525, %v27_v3   ;;  %v1581_v9 = vmov 7   ;;  %v158_v10 = vld [vmem:[#allocation2 + $0xc8] sm:$0xff]  ;;  %v157_v16 = vld [vmem:[#allocation2 + $0xc0] sm:$0xff]  ;;  %v156_v18 = vld [vmem:[#allocation2 + $0xb8] sm:$0xff]  ;;  %vm531_vm13 = vcmask 1043456   ;;  %s1583_s0 = smov 32  }
   0x8   :  { %32 = vperm.xlu0 %1523, %v27_v3   ;;  %88 = vperm.xlu2 %1527, %v27_v3   ;;  %v1610_v11 = vand.u32 4294901760, %v158_v10  ;;  %v1622_v17 = vand.u32 4294901760, %v157_v16  ;;  %v1627_v20 = vand.u32 4294901760, %v156_v18  ;;  %v155_v21 = vld [vmem:[#allocation2 + $0xb0] sm:$0xff]  ;;  %v154_v25 = vld [vmem:[#allocation2 + $0xa8] sm:$0xff]  ;;  %v153_v30 = vld [vmem:[#allocation2 + $0xa0] sm:$0xff] }
   0x9   :  { %v1635_v24 = vand.u32 4294901760, %v155_v21  ;;  %v1647_v29 = vand.u32 4294901760, %v154_v25  ;;  %v1661_v35 = vand.u32 4294901760, %v153_v30  ;;  %v152_v36 = vld [vmem:[#allocation2 + $0x98] sm:$0xff]  ;;  %v151_v42 = vld [vmem:[#allocation2 + $0x90] sm:$0xff]  ;;  %v150_v48 = vld [vmem:[#allocation2 + $0x88] sm:$0xff] }
   0xa   :  { %v1613_v12 = vsub.f32 %v158_v10, %v1610_v11  ;;  %160 = vmatpush.msra.mxu0 %v1610_v11  ;;  %373 = vmatpush.msra.mxu3 %v1610_v11  ;;  %v1625_v19 = vsub.f32 %v157_v16, %v1622_v17  ;;  %v1633_v23 = vsub.f32 %v156_v18, %v1627_v20  ;;  %v1668_v40 = vand.u32 4294901760, %v152_v36  ;;  %v149_v54 = vld [vmem:[#allocation2 + $0x80] sm:$0xff]  ;;  %v148_v60 = vld [vmem:[#allocation2 + $0x78] sm:$0xff]  ;;  %s1584_s19 = smov 96   ;;  %s1585_s20 = smov 64  }
   0xb   :  { %v1645_v28 = vsub.f32 %v155_v21, %v1635_v24  ;;  %v1657_v34 = vsub.f32 %v154_v25, %v1647_v29  ;;  %v1672_v41 = vsub.f32 %v153_v30, %v1661_v35  ;;  %v1682_v46 = vand.u32 4294901760, %v151_v42  ;;  %v145_v18 = vld [vmem:[#allocation2 + $0x60] sm:$0xff] }
   0xc   :  { %v210_v13 = vand.u32 4294901760, %v1613_v12  ;;  %315 = vmatpush.msra.mxu2 %v1613_v12  ;;  %162 = vmatpush.msra.mxu0 %v1622_v17  ;;  %v216_v22 = vand.u32 4294901760, %v1625_v19  ;;  %v222_v27 = vand.u32 4294901760, %v1633_v23  ;;  %v1680_v45 = vsub.f32 %v152_v36, %v1668_v40 }
   0xd   :  { %375 = vmatpush.msra.mxu3 %v1622_v17  ;;  %v228_v33 = vand.u32 4294901760, %v1645_v28  ;;  %v234_v39 = vand.u32 4294901760, %v1657_v34  ;;  %v240_v47 = vand.u32 4294901760, %v1672_v41  ;;  %v1689_v51 = vsub.f32 %v151_v42, %v1682_v46 }
   0xe   :  { %v211_v14 = vsub.f32 %v1613_v12, %v210_v13  ;;  %164 = vmatpush.msra.mxu0 %v1627_v20  ;;  %318 = vmatpush.msra.mxu2 %v1625_v19  ;;  %v217_v26 = vsub.f32 %v1625_v19, %v216_v22  ;;  %v223_v32 = vsub.f32 %v1633_v23, %v222_v27  ;;  %v246_v50 = vand.u32 4294901760, %v1680_v45 }
   0xf   :  { %1526 = vset.pattern.permute.xlu1 %v1577_v4  ;;  %377 = vmatpush.msra.mxu3 %v1627_v20  ;;  %v229_v38 = vsub.f32 %v1645_v28, %v228_v33  ;;  %v235_v44 = vsub.f32 %v1657_v34, %v234_v39  ;;  %v1691_v52 = vand.u32 4294901760, %v150_v48  ;;  %v241_v53 = vsub.f32 %v1672_v41, %v240_v47 }
  0x10   :  { %1524 = vset.pattern.permute.xlu0 %v1578_v5  ;;  %74 = vperm.xlu1 %1526, %v27_v3   ;;  %v212_v15 = vand.u32 4294901760, %v211_v14  ;;  %v218_v31 = vand.u32 4294901760, %v217_v26  ;;  %v224_v37 = vand.u32 4294901760, %v223_v32  ;;  %v247_v55 = vsub.f32 %v1680_v45, %v246_v50  ;;  %v144_v32 = vld [vmem:[#allocation2 + $0x58] sm:$0xff] }
  0x11   :  { %46 = vperm.xlu0 %1524, %v27_v3   ;;  %1528 = vset.pattern.permute.xlu2 %v1575_v1  ;;  %v230_v43 = vand.u32 4294901760, %v229_v38  ;;  %v236_v49 = vand.u32 4294901760, %v235_v44  ;;  %v252_v56 = vand.u32 4294901760, %v1689_v51  ;;  %v1704_v57 = vsub.f32 %v150_v48, %v1691_v52  ;;  %v143_v44 = vld [vmem:[#allocation2 + $0x50] sm:$0xff] }
  0x12   :  { %35 = vperm.xlu2 %1528, %v28_v6   ;;  %213 = vmatpush.msra.mxu1 %v212_v15  ;;  %v1706_v58 = vand.u32 4294901760, %v149_v54  ;;  %v242_v59 = vand.u32 4294901760, %v241_v53  ;;  %v248_v61 = vand.u32 4294901760, %v247_v55  ;;  %v1719_v1 = vand.u32 4294901760, %v148_v60 }
  0x13   :  { %166 = vmatpush.msra.mxu0 %v1635_v24  ;;  %321 = vmatpush.msra.mxu2 %v1633_v23  ;;  %v253_v62 = vsub.f32 %v1689_v51, %v252_v56  ;;  %v258_v63 = vand.u32 4294901760, %v1704_v57  ;;  %v1750_v26 = vand.u32 4294901760, %v145_v18  ;;  %v1765_v42 = vand.u32 4294901760, %v144_v32 }
  0x14   :  { %379 = vmatpush.msra.mxu3 %v1635_v24  ;;  %219 = vmatpush.msra.mxu1 %v218_v31  ;;  %v1779_v55 = vand.u32 4294901760, %v143_v44 }
  0x15   :  { %168 = vmatpush.msra.mxu0 %v1647_v29  ;;  %324 = vmatpush.msra.mxu2 %v1645_v28  ;;  %v1763_v38 = vsub.f32 %v145_v18, %v1750_v26 }
  0x16   :  { %381 = vmatpush.msra.mxu3 %v1647_v29  ;;  %225 = vmatpush.msra.mxu1 %v224_v37 }
  0x17   :  { %327 = vmatpush.msra.mxu2 %v1657_v34  ;;  %170 = vmatpush.msra.mxu0 %v1661_v35  ;;  %v288_v53 = vand.u32 4294901760, %v1763_v38 }
  0x18   :  { %1529 = vset.pattern.permute.xlu1 %v1578_v5  ;;  %383 = vmatpush.msra.mxu3 %v1661_v35 }
  0x19   :  { %1531 = vset.pattern.permute.xlu0 %v1574_v0  ;;  %49 = vperm.xlu1 %1529, %v28_v6   ;;  %v1717_v0 = vsub.f32 %v149_v54, %v1706_v58  ;;  %v1777_v54 = vsub.f32 %v144_v32, %v1765_v42 }
  0x1a   :  { %63 = vperm.xlu0 %1531, %v28_v6   ;;  %1530 = vset.pattern.permute.xlu2 %v1579_v7 }
  0x1b   :  { %102 = vperm.xlu2 %1530, %v27_v3   ;;  %172 = vmatpush.msra.mxu0 %v1668_v40 }
  0x1c   :  { %330 = vmatpush.msra.mxu2 %v1672_v41  ;;  %231 = vmatpush.msra.mxu1 %v230_v43 }
  0x1d   :  { %385 = vmatpush.msra.mxu3 %v1668_v40  ;;  %174 = vmatpush.msra.mxu0 %v1682_v46 }
  0x1e   :  { %333 = vmatpush.msra.mxu2 %v1680_v45  ;;  %237 = vmatpush.msra.mxu1 %v236_v49 }
  0x1f   :  { %387 = vmatpush.msra.mxu3 %v1682_v46  ;;  %176 = vmatpush.msra.mxu0 %v1691_v52 }
  0x20   :  { %336 = vmatpush.msra.mxu2 %v1689_v51  ;;  %243 = vmatpush.msra.mxu1 %v242_v59 }
  0x21   :  { %1532 = vset.pattern.permute.xlu1 %v1580_v8  ;;  %389 = vmatpush.msra.mxu3 %v1691_v52 }
  0x22   :  { %1536 = vset.pattern.permute.xlu0 %v1579_v7  ;;  %116 = vperm.xlu1 %1532, %v27_v3   ;;  %v1731_v7 = vsub.f32 %v148_v60, %v1719_v1  ;;  %v289_v60 = vsub.f32 %v1763_v38, %v288_v53 }
  0x23   :  { %105 = vperm.xlu0 %1536, %v28_v6   ;;  %1533 = vset.pattern.permute.xlu2 %v1577_v4  ;;  %v259_v4 = vsub.f32 %v1704_v57, %v258_v63 }
  0x24   :  { %77 = vperm.xlu2 %1533, %v28_v6   ;;  %178 = vmatpush.msra.mxu0 %v1706_v58  ;;  %v270_v16 = vand.u32 4294901760, %v1731_v7 }
  0x25   :  { %339 = vmatpush.msra.mxu2 %v1704_v57  ;;  %391 = vmatpush.msra.mxu3 %v1706_v58 }
  0x26   :  { %249 = vmatpush.msra.mxu1 %v248_v61  ;;  %180 = vmatpush.msra.mxu0 %v1719_v1  ;;  %v271_v31 = vsub.f32 %v1731_v7, %v270_v16  ;;  %v294_v61 = vand.u32 4294901760, %v1777_v54 }
  0x27   :  { %342 = vmatpush.msra.mxu2 %v1717_v0  ;;  %393 = vmatpush.msra.mxu3 %v1719_v1 }
  0x28   :  { %v272_v43 = vand.u32 4294901760, %v271_v31 }
  0x29   :  { %345 = vmatpush.msra.mxu2 %v1731_v7 }
  0x2a   :  { %1534 = vset.pattern.permute.xlu1 %v1581_v9 }
  0x2b   :  { %1539 = vset.pattern.permute.xlu0 %v1581_v9  ;;  %130 = vperm.xlu1 %1534, %v27_v3   ;;  %v254_v3 = vand.u32 4294901760, %v253_v62  ;;  %v299_v62 = vsub.f32 %v143_v44, %v1779_v55 }
  0x2c   :  { %1535 = vset.pattern.permute.xlu2 %v1576_v2  ;;  %v147_v2 = vld [vmem:[#allocation2 + $0x70] sm:$0xff] }
  0x2d   :  { %91 = vperm.xlu2 %1535, %v28_v6   ;;  %v1725_v5 = vand.u32 4294901760, %v147_v2  ;;  %255 = vmatpush.msra.mxu1 %v254_v3 }
  0x2f   :  { %v1735_v10 = vsub.f32 %v147_v2, %v1725_v5  ;;  %182 = vmatpush.msra.mxu0 %v1725_v5  ;;  %395 = vmatpush.msra.mxu3 %v1725_v5  ;;  %v290_v2 = vand.u32 4294901760, %v289_v60 }
  0x31   :  { %v276_v21 = vand.u32 4294901760, %v1735_v10  ;;  %348 = vmatpush.msra.mxu2 %v1735_v10 }
  0x33   :  { %1537 = vset.pattern.permute.xlu1 %v1580_v8  ;;  %v146_v8 = vld [vmem:[#allocation2 + $0x68] sm:$0xff]  ;;  %v277_v36 = vsub.f32 %v1735_v10, %v276_v21 }
  0x34   :  { %119 = vperm.xlu1 %1537, %v28_v6   ;;  %v1737_v14 = vand.u32 4294901760, %v146_v8 }
  0x35   :  { %1538 = vset.pattern.permute.xlu2 %v1581_v9  ;;  %v260_v9 = vand.u32 4294901760, %v259_v4  ;;  %v278_v48 = vand.u32 4294901760, %v277_v36  ;;  %v295_v4 = vsub.f32 %v1777_v54, %v294_v61 }
  0x36   :  { %133 = vperm.xlu2 %1538, %v28_v6   ;;  %v264_v6 = vand.u32 4294901760, %v1717_v0  ;;  %v1748_v25 = vsub.f32 %v146_v8, %v1737_v14  ;;  %184 = vmatpush.msra.mxu0 %v1737_v14  ;;  %v300_v8 = vand.u32 4294901760, %v299_v62 }
  0x37   :  { %261 = vmatpush.msra.mxu1 %v260_v9  ;;  %397 = vmatpush.msra.mxu3 %v1737_v14  ;;  %v296_v9 = vand.u32 4294901760, %v295_v4  ;;  %v554_v4 = vld [vmem:[#allocation2 + $0x18] sm:$0xff] }
  0x38   :  { %v265_v15 = vsub.f32 %v1717_v0, %v264_v6  ;;  %v282_v37 = vand.u32 4294901760, %v1748_v25  ;;  %186 = vmatpush.msra.mxu0 %v1750_v26  ;;  %351 = vmatpush.msra.mxu2 %v1748_v25 }
  0x39   :  { %399 = vmatpush.msra.mxu3 %v1750_v26 }
  0x3a   :  { %v266_v30 = vand.u32 4294901760, %v265_v15  ;;  %v283_v49 = vsub.f32 %v1748_v25, %v282_v37  ;;  %188 = vmatpush.msra.mxu0 %v1765_v42  ;;  %354 = vmatpush.msra.mxu2 %v1763_v38  ;;  %v301_v15 = vsub.f32 %v299_v62, %v300_v8 }
  0x3b   :  { %401 = vmatpush.msra.mxu3 %v1765_v42 }
  0x3c   :  { %267 = vmatpush.msra.mxu1 %v266_v30  ;;  %v284_v59 = vand.u32 4294901760, %v283_v49  ;;  %190 = vmatpush.msra.mxu0 %v1779_v55  ;;  %v302_v12 = vand.u32 4294901760, %v301_v15 }
  0x3d   :  { %357 = vmatpush.msra.mxu2 %v1777_v54  ;;  %403 = vmatpush.msra.mxu3 %v1779_v55 }
  0x3e   :  { %273 = vmatpush.msra.mxu1 %v272_v43  ;;  %420 = vmatpush.msrb.mxu0 %v210_v13 }
  0x3f   :  { %360 = vmatpush.msra.mxu2 %v299_v62 }
  0x40   :  { %279 = vmatpush.msra.mxu1 %v278_v48  ;;  %424 = vmatpush.msrb.mxu0 %v216_v22 }
  0x42   :  { %285 = vmatpush.msra.mxu1 %v284_v59  ;;  %428 = vmatpush.msrb.mxu0 %v222_v27 }
  0x44   :  { %291 = vmatpush.msra.mxu1 %v290_v2  ;;  %432 = vmatpush.msrb.mxu0 %v228_v33 }
  0x46   :  { %297 = vmatpush.msra.mxu1 %v296_v9  ;;  %436 = vmatpush.msrb.mxu0 %v234_v39  ;;  %v553_v9 = vld [vmem:[#allocation2 + $0x10] sm:$0xff] }
  0x48   :  { %303 = vmatpush.msra.mxu1 %v302_v12  ;;  %440 = vmatpush.msrb.mxu0 %v240_v47  ;;  %v1880_v12 = vand.u32 4294901760, %v553_v9 }
  0x4a   :  { %491 = vmatpush.msrb.mxu1 %v1610_v11  ;;  %444 = vmatpush.msrb.mxu0 %v246_v50  ;;  %v29_v11 = vlaneseq }
  0x4c   :  { %493 = vmatpush.msrb.mxu1 %v1622_v17  ;;  %448 = vmatpush.msrb.mxu0 %v252_v56 }
  0x4e   :  { %495 = vmatpush.msrb.mxu1 %v1627_v20  ;;  %452 = vmatpush.msrb.mxu0 %v258_v63  ;;  %v1821_v20 = vand.u32 127, %v29_v11 }
  0x50   :  { %497 = vmatpush.msrb.mxu1 %v1635_v24  ;;  %456 = vmatpush.msrb.mxu0 %v264_v6  ;;  %v1582_v24 = vmov 0.0  }
  0x52   :  { %499 = vmatpush.msrb.mxu1 %v1647_v29  ;;  %460 = vmatpush.msrb.mxu0 %v270_v16 }
  0x54   :  { %501 = vmatpush.msrb.mxu1 %v1661_v35  ;;  %464 = vmatpush.msrb.mxu0 %v276_v21 }
  0x56   :  { %503 = vmatpush.msrb.mxu1 %v1668_v40  ;;  %468 = vmatpush.msrb.mxu0 %v282_v37 }
  0x58   :  { %505 = vmatpush.msrb.mxu1 %v1682_v46  ;;  %472 = vmatpush.msrb.mxu0 %v288_v53 }
  0x5a   :  { %507 = vmatpush.msrb.mxu1 %v1691_v52  ;;  %476 = vmatpush.msrb.mxu0 %v294_v61 }
  0x5c   :  { %509 = vmatpush.msrb.mxu1 %v1706_v58  ;;  %480 = vmatpush.msrb.mxu0 %v300_v8  ;;  %v1874_v8 = vand.u32 4294901760, %v554_v4 }
  0x5e   :  { %511 = vmatpush.msrb.mxu1 %v1719_v1  ;;  %583 = vmatpush.msrb.mxu2 %v1874_v8  ;;  %v1878_v15 = vsub.f32 %v554_v4, %v1874_v8  ;;  %v561_v4 = vld [vmem:[#allocation2 + $0xf8] sm:$0xff] }
  0x60   :  { %513 = vmatpush.msrb.mxu1 %v1725_v5  ;;  %585 = vmatpush.msrb.mxu2 %v1880_v12 }
  0x62   :  { %v1793_v3 = vpop.permute.xlu2 %88  ;;  %515 = vmatpush.msrb.mxu1 %v1737_v14 }
  0x63   :  { %vm93_vm6 = vcmp.eq.s32.totalorder %v1821_v20, %v1793_v3 }
  0x64   :  { %517 = vmatpush.msrb.mxu1 %v1750_v26  ;;  %v1496_v51 = vsel %vm93_vm6, 1.0, %v1582_v24  ;;  %vm757_vm6 = vcmask 523264  }
  0x66   :  { %519 = vmatpush.msrb.mxu1 %v1765_v42 }
  0x68   :  { %521 = vmatpush.msrb.mxu1 %v1779_v55 }
  0x6c   :  { %v36_v19 = vpop.permute.xlu2 %35 }
  0x6d   :  { %vm38_vm5 = vcmp.eq.s32.totalorder %v1821_v20, %v36_v19  ;;  %v1884_v19 = vsub.f32 %v553_v9, %v1880_v12 }
  0x6e   :  { %v1489_v50 = vsel %vm38_vm5, 1.0, %v1582_v24  ;;  %vm566_vm5 = vcmask 261120  }
  0x75   :  { %v103_v23 = vpop.permute.xlu2 %102 }
  0x76   :  { %vm107_vm8 = vcmp.eq.s32.totalorder %v1821_v20, %v103_v23  ;;  %v619_v23 = vand.u32 4294901760, %v1884_v19 }
  0x77   :  { %v1498_v58 = vsel %vm107_vm8, 1.0, %v1582_v24 }
  0x79   :  { %v61_v13 = vpop.permute.xlu1 %60 }
  0x7a   :  { %v33_v18 = vpop.permute.xlu0 %32  ;;  %vm65_vm2 = vcmp.eq.s32.totalorder %v1821_v20, %v61_v13  ;;  %v552_v13 = vld [vmem:[#allocation2 + $0x8] sm:$0xff] }
  0x7b   :  { %vm37_vm0 = vcmp.eq.s32.totalorder %v1821_v20, %v33_v18  ;;  %v1492_v34 = vsel %vm65_vm2, 1.0, %v1582_v24  ;;  %v613_v18 = vand.u32 4294901760, %v1878_v15  ;;  %v1887_v11 = vand.u32 4294901760, %v552_v13 }
  0x7c   :  { %v1488_v27 = vsel %vm37_vm0, 1.0, %v1582_v24 }
  0x7d   :  { %587 = vmatpush.msrb.mxu2 %v1887_v11 }
  0x7e   :  { %v78_v39 = vpop.permute.xlu2 %77 }
  0x7f   :  { %vm80_vm10 = vcmp.eq.s32.totalorder %v1821_v20, %v78_v39 }
  0x80   :  { %v1495_v5 = vsel %vm80_vm10, 1.0, %v1582_v24 }
  0x82   :  { %v75_v17 = vpop.permute.xlu1 %74 }
  0x83   :  { %v47_v22 = vpop.permute.xlu0 %46  ;;  %vm79_vm3 = vcmp.eq.s32.totalorder %v1821_v20, %v75_v17  ;;  %v551_v17 = vld [vmem:[#allocation2] sm:$0xff] }
  0x84   :  { %vm51_vm1 = vcmp.eq.s32.totalorder %v1821_v20, %v47_v22  ;;  %v1494_v41 = vsel %vm79_vm3, 1.0, %v1582_v24  ;;  %v614_v22 = vsub.f32 %v1878_v15, %v613_v18 }
  0x85   :  { %v1490_v28 = vsel %vm51_vm1, 1.0, %v1582_v24 }
  0x86   :  { %v57_v33 = vadd.f32 %v1490_v28, %v1488_v27  ;;  %v1894_v27 = vsub.f32 %v552_v13, %v1887_v11  ;;  %v1896_v28 = vand.u32 4294901760, %v551_v17 }
  0x87   :  { %v92_v63 = vpop.permute.xlu2 %91 }
  0x88   :  { %v71_v35 = vadd.f32 %v1492_v34, %v57_v33  ;;  %vm94_vm11 = vcmp.eq.s32.totalorder %v1821_v20, %v92_v63  ;;  %v615_v33 = vand.u32 4294901760, %v614_v22  ;;  %v620_v34 = vsub.f32 %v1884_v19, %v619_v23  ;;  %589 = vmatpush.msrb.mxu2 %v1896_v28 }
  0x89   :  { %v1497_v25 = vsel %vm94_vm11, 1.0, %v1582_v24  ;;  %v1904_v39 = vsub.f32 %v551_v17, %v1896_v28  ;;  %v559_v17 = vld [vmem:[#allocation2 + $0xe8] sm:$0xff]  ;;  %vm1480_vm11 = vcmask 785408  }
  0x8a   :  { %v85_v45 = vadd.f32 %v1494_v41, %v71_v35  ;;  %v625_v35 = vand.u32 4294901760, %v1894_v27  ;;  %616 = vmatpush.msrb.mxu3 %v615_v33  ;;  %v621_v41 = vand.u32 4294901760, %v620_v34  ;;  %v558_v33 = vld [vmem:[#allocation2 + $0xe0] sm:$0xff] }
  0x8b   :  { %v50_v29 = vpop.permute.xlu1 %49 }
  0x8c   :  { %vm52_vm4 = vcmp.eq.s32.totalorder %v1821_v20, %v50_v29  ;;  %v64_v40 = vpop.permute.xlu0 %63  ;;  %v99_v57 = vadd.f32 %v1496_v51, %v85_v45  ;;  %v626_v45 = vsub.f32 %v1894_v27, %v625_v35  ;;  %622 = vmatpush.msrb.mxu3 %v621_v41 }
  0x8d   :  { %v1491_v46 = vsel %vm52_vm4, 1.0, %v1582_v24  ;;  %vm66_vm7 = vcmp.eq.s32.totalorder %v1821_v20, %v64_v40 }
  0x8e   :  { %v58_v52 = vadd.f32 %v1491_v46, %v1489_v50  ;;  %v1493_v56 = vsel %vm66_vm7, 1.0, %v1582_v24  ;;  %v113_v6 = vadd.f32 %v1498_v58, %v99_v57  ;;  %v631_v46 = vand.u32 4294901760, %v1904_v39 }
  0x8f   :  { %vm1202_vm7 = vcmask 519168  }
  0x90   :  { %v72_v0 = vadd.f32 %v1493_v56, %v58_v52  ;;  %v134_v32 = vpop.permute.xlu2 %133  ;;  %v632_v50 = vsub.f32 %v1904_v39, %v631_v46 }
  0x91   :  { %vm136_vm15 = vcmp.eq.s32.totalorder %v1821_v20, %v134_v32 }
  0x92   :  { %v86_v16 = vadd.f32 %v1495_v5, %v72_v0  ;;  %v1503_v49 = vsel %vm136_vm15, 1.0, %v1582_v24  ;;  %v633_v51 = vand.u32 4294901760, %v632_v50 }
  0x94   :  { %v117_v47 = vpop.permute.xlu1 %116  ;;  %v100_v36 = vadd.f32 %v1497_v25, %v86_v16 }
  0x95   :  { %vm121_vm9 = vcmp.eq.s32.totalorder %v1821_v20, %v117_v47  ;;  %v106_v14 = vpop.permute.xlu0 %105  ;;  %v627_v47 = vand.u32 4294901760, %v626_v45  ;;  %v557_v45 = vld [vmem:[#allocation2 + $0xd8] sm:$0xff] }
  0x96   :  { %v1500_v1 = vsel %vm121_vm9, 1.0, %v1582_v24  ;;  %vm108_vm14 = vcmp.eq.s32.totalorder %v1821_v20, %v106_v14 }
  0x97   :  { %v127_v10 = vadd.f32 %v1500_v1, %v113_v6  ;;  %v1499_v37 = vsel %vm108_vm14, 1.0, %v1582_v24  ;;  %628 = vmatpush.msrb.mxu3 %v627_v47 }
  0x98   :  { %v114_v44 = vadd.f32 %v1499_v37, %v100_v36 }
  0x99   :  { %634 = vmatpush.msrb.mxu3 %v633_v51  ;;  %v781_v51 = vand.u32 4294901760, %v557_v45 }
  0x9d   :  { %v131_v7 = vpop.permute.xlu1 %130 }
  0x9e   :  { %vm135_vm12 = vcmp.eq.s32.totalorder %v1821_v20, %v131_v7 }
  0x9f   :  { %v1502_v21 = vsel %vm135_vm12, 1.0, %v1582_v24 }
  0xa0   :  { %v141_v26 = vadd.f32 %v1502_v21, %v127_v10 }
  0xa2   :  { %v191_v30 = vand.u32 4294901760, %v141_v26  ;;  %v532_v31 = vsel %vm531_vm13, %v141_v26, 0.0 }
  0xa3   :  { %533 = vadd.xlane.f32.xlu1 %v532_v31 }
  0xa4   :  { %305 = vmatmul.f32.vlgmr.msra.gmra.mxu1 %v191_v30  ;;  %v192_v38 = vsub.f32 %v141_v26, %v191_v30 }
  0xa6   :  { %v120_v42 = vpop.permute.xlu1 %119  ;;  %363 = vmatmul.f32.vlgmr.msra.gmra.mxu2 %v192_v38  ;;  %v193_v43 = vand.u32 4294901760, %v192_v38 }
  0xa7   :  { %vm122_vm0 = vcmp.eq.s32.totalorder %v1821_v20, %v120_v42  ;;  %654 = vmatpush.msra.mxu2 %v1878_v15  ;;  %v1949_v15 = vand.u32 4294901760, %v561_v4 }
  0xa8   :  { %v1501_v48 = vsel %vm122_vm0, 1.0, %v1582_v24  ;;  %407 = vmatmul.f32.vlgmr.msra.gmra.mxu3 %v193_v43  ;;  %v194_v53 = vsub.f32 %v192_v38, %v193_v43 }
  0xa9   :  { %v128_v54 = vadd.f32 %v1501_v48, %v114_v44  ;;  %657 = vmatpush.msra.mxu2 %v1884_v19  ;;  %683 = vmatpush.msra.mxu3 %v1874_v8  ;;  %v1957_v19 = vsub.f32 %v561_v4, %v1949_v15 }
  0xaa   :  { %v195_v55 = vand.u32 4294901760, %v194_v53 }
  0xab   :  { %v142_v59 = vadd.f32 %v1503_v49, %v128_v54  ;;  %660 = vmatpush.msra.mxu2 %v1894_v27  ;;  %685 = vmatpush.msra.mxu3 %v1880_v12  ;;  %v816_v27 = vand.u32 4294901760, %v1957_v19 }
  0xac   :  { %196 = vmatmul.f32.vlgmr.msra.gmra.mxu0 %v195_v55 }
  0xad   :  { %v199_v60 = vand.u32 4294901760, %v142_v59  ;;  %663 = vmatpush.msra.mxu2 %v1904_v39  ;;  %687 = vmatpush.msra.mxu3 %v1887_v11 }
  0xaf   :  { %309 = vmatmul.f32.gmra.mxu1 %v199_v60  ;;  %v200_v61 = vsub.f32 %v142_v59, %v199_v60  ;;  %689 = vmatpush.msra.mxu3 %v1896_v28 }
  0xb1   :  { %368 = vmatmul.f32.gmra.mxu2 %v200_v61  ;;  %v201_v62 = vand.u32 4294901760, %v200_v61 }
  0xb3   :  { %413 = vmatmul.f32.gmra.mxu3 %v201_v62  ;;  %v202_v2 = vsub.f32 %v200_v61, %v201_v62  ;;  %v562_v62 = vld [vmem:[#allocation2 + $0x100] sm:$0xff] }
  0xb5   :  { %v203_v3 = vand.u32 4294901760, %v202_v2 }
  0xb7   :  { %204 = vmatmul.f32.gmra.mxu0 %v203_v3  ;;  %523 = vmatmul.f32.vlgmr.msrb.gmra.mxu1 %v191_v30  ;;  %v1941_v3 = vand.u32 4294901760, %v562_v62 }
  0xb9   :  { %v1947_v9 = vsub.f32 %v562_v62, %v1941_v3 }
  0xbf   :  { %482 = vmatmul.f32.vlgmr.msrb.gmra.mxu0 %v191_v30  ;;  %527 = vmatmul.f32.gmra.mxu1 %v199_v60 }
  0xc7   :  { %486 = vmatmul.f32.gmra.mxu0 %v199_v60  ;;  %v563_v60 = vld [vmem:[#allocation2 + $0x108] sm:$0xff] }
  0xc8   :  { %v1936_v61 = vand.u32 4294901760, %v563_v60 }
  0xca   :  { %v1939_v2 = vsub.f32 %v563_v60, %v1936_v61  ;;  %770 = vmatpush.msra.mxu0 %v1936_v61 }
  0xcc   :  { %772 = vmatpush.msra.mxu0 %v1941_v3 }
  0xce   :  { %774 = vmatpush.msra.mxu0 %v1949_v15 }
 0x116   :  { %v534_v29 = vpop.xlane.xlu1 %533 }
 0x117   :  { %v535_v40 = vmax.f32 %v534_v29, 1.0  ;;  %v1969_v29 = vand.u32 4294901760, %v559_v17 }
 0x119   :  { %1543 = vrcp.f32 %v535_v40  ;;  %v547_v25 = vand.u32 2147483648, %v535_v40  ;;  %vm541_vm2 = vweird.f32 %v535_v40  ;;  %v545_v30 = vand.u32 2147483647, %v535_v40 }
 0x11a   :  { %v827_v41 = vsub.f32 %v559_v17, %v1969_v29 }
 0x11b   :  { %v548_v38 = vor.u32 1.1754944e-38, %v547_v25  ;;  %vm546_vm4 = vcmp.eq.f32.partialorder %v545_v30, 8.507059e+37 }
 0x11f   :  { %v1544_v52 = vpop.eup %1543 }
 0x120   :  { %v537_v58 = vmul.f32 %v1544_v52, %v535_v40  ;;  %vm542_vm1 = vweird.f32 %v1544_v52  ;;  %v779_v40 = vand.u32 4294901760, %v558_v33 }
 0x121   :  { %v306_v56 = vpop.f32.mrf.mxu1  ;;  %vm543_vm3 = vmor %vm541_vm2, %vm542_vm1 }
 0x122   :  { %v538_v63 = vsub.f32 1.0, %v537_v58  ;;  %v833_v50 = vsub.f32 %v558_v33, %v779_v40 }
 0x124   :  { %v539_v7 = vmul.f32 %v1544_v52, %v538_v63  ;;  %v834_v58 = vand.u32 4294901760, %v833_v50  ;;  %v839_v63 = vsub.f32 %v557_v45, %v781_v51 }
 0x126   :  { %v540_v16 = vadd.f32 %v1544_v52, %v539_v7  ;;  %v840_v7 = vand.u32 4294901760, %v839_v63 }
 0x128   :  { %v544_v36 = vsel %vm543_vm3, %v1544_v52, %v540_v16  ;;  %v828_v52 = vand.u32 4294901760, %v827_v41 }
 0x129   :  { %v197_v57 = vpop.f32.mrf.mxu0  ;;  %v364_v10 = vpop.f32.mrf.mxu2  ;;  %v549_v43 = vsel %vm546_vm4, %v548_v38, %v544_v36 }
 0x12a   :  { %v307_v0 = vadd.f32 %v306_v56, %v197_v57  ;;  %v556_v56 = vld [vmem:[#allocation2 + $0xd0] sm:$0xff] }
 0x12b   :  { %v408_v21 = vpop.f32.mrf.mxu3 }
 0x12c   :  { %v310_v1 = vpop.f32.mrf.mxu1  ;;  %v365_v14 = vadd.f32 %v364_v10, %v307_v0  ;;  %v783_v0 = vand.u32 4294901760, %v556_v56 }
 0x12e   :  { %v409_v26 = vadd.f32 %v408_v21, %v365_v14  ;;  %v845_v10 = vsub.f32 %v556_v56, %v783_v0  ;;  %v841_v21 = vsub.f32 %v839_v63, %v840_v7 }
 0x130   :  { %v846_v25 = vand.u32 4294901760, %v845_v10 }
 0x132   :  { %v847_v30 = vsub.f32 %v845_v10, %v846_v25 }
 0x134   :  { %v205_v5 = vpop.f32.mrf.mxu0  ;;  %v524_v37 = vpop.f32.mrf.mxu1 }
 0x135   :  { %v1920_v6 = vadd.f32 %v310_v1, %v205_v5  ;;  %v829_v1 = vsub.f32 %v827_v41, %v828_v52  ;;  %v835_v5 = vsub.f32 %v833_v50, %v834_v58  ;;  %v1980_v36 = vpop.f32.mrf.mxu2 }
 0x137   :  { %v830_v14 = vand.u32 4294901760, %v829_v1  ;;  %v836_v16 = vand.u32 4294901760, %v835_v5 }
 0x13c   :  { %v483_v31 = vpop.f32.mrf.mxu0 }
 0x13d   :  { %v484_v32 = vadd.f32 %v483_v31, %v409_v26  ;;  %v842_v26 = vand.u32 4294901760, %v841_v21  ;;  %v848_v31 = vand.u32 4294901760, %v847_v30 }
 0x13f   :  { %v1922_v42 = vadd.f32 %v524_v37, %v484_v32  ;;  %v1977_v32 = vpop.f32.mrf.mxu3 }
 0x141   :  { %v550_v44 = vmul.f32 %v549_v43, %v1922_v42  ;;  %v1540_v43 = vld [vmem:[#allocation2 + $0x20] ss:$0 sm:$0xff] }
 0x143   :  { %v568_v48 = vsel %vm566_vm5, %v550_v44, 0 }
 0x144   :  { %v590_v49 = vand.u32 4294901760, %v568_v48 }
 0x146   :  { %v591_v53 = vsub.f32 %v568_v48, %v590_v49  ;;  %636 = vmatmul.f32.vlgmr.msrb.gmra.mxu3 %v590_v49 }
 0x147   :  { %743 = vmatpush.msrb.mxu3 %v1874_v8  ;;  %v804_v8 = vand.u32 4294901760, %v1939_v2 }
 0x148   :  { %v592_v54 = vand.u32 4294901760, %v591_v53 }
 0x149   :  { %745 = vmatpush.msrb.mxu3 %v1880_v12  ;;  %v560_v12 = vld [vmem:[#allocation2 + $0xf0] sm:$0xff]  ;;  %v805_v13 = vsub.f32 %v1939_v2, %v804_v8 }
 0x14a   :  { %v593_v55 = vsub.f32 %v591_v53, %v592_v54 }
 0x14b   :  { %747 = vmatpush.msrb.mxu3 %v1887_v11  ;;  %v1959_v11 = vand.u32 4294901760, %v560_v12  ;;  %v806_v22 = vand.u32 4294901760, %v805_v13  ;;  %v1001_v13 = vld [vmem:[#allocation2 + $0x40] sm:$0xff] }
 0x14c   :  { %v594_v59 = vand.u32 4294901760, %v593_v55 }
 0x14d   :  { %749 = vmatpush.msrb.mxu3 %v1896_v28  ;;  %v821_v28 = vsub.f32 %v560_v12, %v1959_v11  ;;  %776 = vmatpush.msra.mxu0 %v1959_v11 }
 0x14e   :  { %595 = vmatmul.f32.vlgmr.msrb.gmra.mxu2 %v594_v59  ;;  %693 = vmatmul.f32.vlgmr.msra.gmra.mxu3 %v592_v54 }
 0x14f   :  { %712 = vmatpush.msrb.mxu2 %v613_v18  ;;  %902 = vmatpush.msra.mxu3 %v1936_v61  ;;  %v810_v18 = vand.u32 4294901760, %v1947_v9  ;;  %v822_v39 = vand.u32 4294901760, %v821_v28 }
 0x150   :  { %807 = vmatpush.msra.mxu1 %v806_v22  ;;  %778 = vmatpush.msra.mxu0 %v1969_v29  ;;  %v999_v22 = vld [vmem:[#allocation2 + $0x30] sm:$0xff] }
 0x151   :  { %716 = vmatpush.msrb.mxu2 %v619_v23  ;;  %904 = vmatpush.msra.mxu3 %v1941_v3  ;;  %v811_v23 = vsub.f32 %v1947_v9, %v810_v18  ;;  %v823_v47 = vsub.f32 %v821_v28, %v822_v39 }
 0x152   :  { %780 = vmatpush.msra.mxu0 %v779_v40 }
 0x153   :  { %720 = vmatpush.msrb.mxu2 %v625_v35  ;;  %906 = vmatpush.msra.mxu3 %v1949_v15  ;;  %v812_v34 = vand.u32 4294901760, %v811_v23  ;;  %v817_v35 = vsub.f32 %v1957_v19, %v816_v27  ;;  %v824_v57 = vand.u32 4294901760, %v823_v47 }
 0x154   :  { %782 = vmatpush.msra.mxu0 %v781_v51 }
 0x155   :  { %724 = vmatpush.msrb.mxu2 %v631_v46  ;;  %908 = vmatpush.msra.mxu3 %v1959_v11  ;;  %v818_v46 = vand.u32 4294901760, %v817_v35 }
 0x156   :  { %666 = vmatmul.f32.vlgmr.msra.gmra.mxu2 %v591_v53  ;;  %751 = vmatmul.f32.vlgmr.msrb.gmra.mxu3 %v590_v49 }
 0x157   :  { %865 = vmatpush.msra.mxu2 %v1939_v2  ;;  %910 = vmatpush.msra.mxu3 %v1969_v29 }
 0x158   :  { %813 = vmatpush.msra.mxu1 %v812_v34  ;;  %784 = vmatpush.msra.mxu0 %v783_v0 }
 0x159   :  { %868 = vmatpush.msra.mxu2 %v1947_v9  ;;  %912 = vmatpush.msra.mxu3 %v779_v40 }
 0x15a   :  { %819 = vmatpush.msra.mxu1 %v818_v46  ;;  %935 = vmatpush.msrb.mxu0 %v804_v8 }
 0x15b   :  { %871 = vmatpush.msra.mxu2 %v1957_v19  ;;  %914 = vmatpush.msra.mxu3 %v781_v51  ;;  %v1000_v19 = vld [vmem:[#allocation2 + $0x38] sm:$0xff] }
 0x15c   :  { %825 = vmatpush.msra.mxu1 %v824_v57  ;;  %939 = vmatpush.msrb.mxu0 %v810_v18  ;;  %v1026_v18 = vand.u32 4294901760, %v1001_v13  ;;  %v1028_v17 = vand.u32 4294901760, %v1000_v19 }
 0x15d   :  { %874 = vmatpush.msra.mxu2 %v821_v28  ;;  %916 = vmatpush.msra.mxu3 %v783_v0  ;;  %v1030_v28 = vand.u32 4294901760, %v999_v22 }
 0x15e   :  { %726 = vmatmul.f32.vlgmr.msrb.gmra.mxu2 %v590_v49  ;;  %831 = vmatpush.msra.mxu1 %v830_v14 }
 0x15f   :  { %877 = vmatpush.msra.mxu2 %v827_v41  ;;  %943 = vmatpush.msrb.mxu0 %v816_v27  ;;  %v1062_v27 = vsub.f32 %v1000_v19, %v1028_v17  ;;  %v1068_v35 = vsub.f32 %v999_v22, %v1030_v28 }
 0x160   :  { %837 = vmatpush.msra.mxu1 %v836_v16 }
 0x161   :  { %880 = vmatpush.msra.mxu2 %v833_v50  ;;  %947 = vmatpush.msrb.mxu0 %v822_v39  ;;  %v1063_v34 = vand.u32 4294901760, %v1062_v27  ;;  %v1069_v45 = vand.u32 4294901760, %v1068_v35 }
 0x162   :  { %843 = vmatpush.msra.mxu1 %v842_v26 }
 0x163   :  { %883 = vmatpush.msra.mxu2 %v839_v63  ;;  %951 = vmatpush.msrb.mxu0 %v828_v52  ;;  %v1064_v41 = vsub.f32 %v1062_v27, %v1063_v34  ;;  %v1070_v50 = vsub.f32 %v1068_v35, %v1069_v45  ;;  %v487_v63 = vpop.f32.mrf.mxu0 }
 0x164   :  { %849 = vmatpush.msra.mxu1 %v848_v31 }
 0x165   :  { %886 = vmatpush.msra.mxu2 %v845_v10  ;;  %955 = vmatpush.msrb.mxu0 %v834_v58  ;;  %v1065_v47 = vand.u32 4294901760, %v1064_v41  ;;  %v1071_v52 = vand.u32 4294901760, %v1070_v50  ;;  %v528_v58 = vpop.f32.mrf.mxu1  ;;  %v1006_v50 = vld [vmem:[#allocation2 + $0x130] sm:$0xff] }
 0x166   :  { %978 = vmatpush.msrb.mxu1 %v1936_v61 }
 0x167   :  { %959 = vmatpush.msrb.mxu0 %v840_v7  ;;  %1027 = vmatpush.msrb.mxu2 %v1026_v18 }
 0x168   :  { %980 = vmatpush.msrb.mxu1 %v1941_v3 }
 0x169   :  { %963 = vmatpush.msrb.mxu0 %v846_v25  ;;  %1029 = vmatpush.msrb.mxu2 %v1028_v17 }
 0x16a   :  { %982 = vmatpush.msrb.mxu1 %v1949_v15 }
 0x16b   :  { %1031 = vmatpush.msrb.mxu2 %v1030_v28 }
 0x16c   :  { %984 = vmatpush.msrb.mxu1 %v1959_v11  ;;  %v1056_v11 = vsub.f32 %v1001_v13, %v1026_v18 }
 0x16e   :  { %986 = vmatpush.msrb.mxu1 %v1969_v29  ;;  %v1057_v23 = vand.u32 4294901760, %v1056_v11  ;;  %v998_v29 = vld [vmem:[#allocation2 + $0x28] sm:$0xff] }
 0x16f   :  { %v1032_v39 = vand.u32 4294901760, %v998_v29 }
 0x170   :  { %988 = vmatpush.msrb.mxu1 %v779_v40  ;;  %v1058_v33 = vsub.f32 %v1056_v11, %v1057_v23 }
 0x171   :  { %v1074_v46 = vsub.f32 %v998_v29, %v1032_v39  ;;  %1033 = vmatpush.msrb.mxu2 %v1032_v39 }
 0x172   :  { %990 = vmatpush.msrb.mxu1 %v781_v51  ;;  %v1059_v40 = vand.u32 4294901760, %v1058_v33 }
 0x173   :  { %v1075_v51 = vand.u32 4294901760, %v1074_v46 }
 0x174   :  { %992 = vmatpush.msrb.mxu1 %v783_v0  ;;  %1060 = vmatpush.msrb.mxu3 %v1059_v40  ;;  %v1541_v0 = vld [vmem:[#allocation2 + $0x110] ss:$0 sm:$0xff]  ;;  %v1008_v40 = vld [vmem:[#allocation2 + $0x140] sm:$0xff] }
 0x175   :  { %v1076_v56 = vsub.f32 %v1074_v46, %v1075_v51 }
 0x176   :  { %1066 = vmatpush.msrb.mxu3 %v1065_v47  ;;  %v1007_v47 = vld [vmem:[#allocation2 + $0x138] sm:$0xff] }
 0x177   :  { %v1077_v57 = vand.u32 4294901760, %v1076_v56  ;;  %v1003_v56 = vld [vmem:[#allocation2 + $0x118] sm:$0xff] }
 0x178   :  { %1072 = vmatpush.msrb.mxu3 %v1071_v52  ;;  %v1004_v52 = vld [vmem:[#allocation2 + $0x120] sm:$0xff] }
 0x17a   :  { %1078 = vmatpush.msrb.mxu3 %v1077_v57 }
 0x1c9   :  { %v637_v37 = vpop.f32.mrf.mxu3 }
 0x1d1   :  { %v596_v38 = vpop.f32.mrf.mxu2  ;;  %v694_v48 = vpop.f32.mrf.mxu3 }
 0x1d2   :  { %v597_v44 = vadd.f32 %v1540_v43, %v596_v38 }
 0x1d4   :  { %v638_v53 = vadd.f32 %v637_v37, %v597_v44 }
 0x1d9   :  { %v667_v49 = vpop.f32.mrf.mxu2  ;;  %v752_v61 = vpop.f32.mrf.mxu3 }
 0x1da   :  { %v668_v54 = vadd.f32 %v667_v49, %v638_v53 }
 0x1dc   :  { %v695_v55 = vadd.f32 %v694_v48, %v668_v54 }
 0x1e1   :  { %v727_v59 = vpop.f32.mrf.mxu2 }
 0x1e2   :  { %v728_v60 = vadd.f32 %v727_v59, %v695_v55 }
 0x1e4   :  { %v753_v62 = vadd.f32 %v752_v61, %v728_v60 }
 0x1e6   :  { %v755_v2 = vmax.f32 %v753_v62, 0.0 }
 0x1e8   :  { %v759_v3 = vsel %vm757_vm6, %v755_v2, 0 }
 0x1e9   :  { %v785_v4 = vand.u32 4294901760, %v759_v3 }
 0x1eb   :  { %v786_v8 = vsub.f32 %v759_v3, %v785_v4  ;;  %851 = vmatmul.f32.vlgmr.msra.gmra.mxu1 %v785_v4 }
 0x1ec   :  { %1187 = vmatpush.msra.mxu1 %v1026_v18 }
 0x1ed   :  { %889 = vmatmul.f32.vlgmr.msra.gmra.mxu2 %v786_v8  ;;  %v787_v9 = vand.u32 4294901760, %v786_v8 }
 0x1ee   :  { %1189 = vmatpush.msra.mxu1 %v1028_v17  ;;  %1098 = vmatpush.msra.mxu2 %v1056_v11 }
 0x1ef   :  { %920 = vmatmul.f32.vlgmr.msra.gmra.mxu3 %v787_v9  ;;  %v788_v15 = vsub.f32 %v786_v8, %v787_v9 }
 0x1f0   :  { %1191 = vmatpush.msra.mxu1 %v1030_v28  ;;  %1101 = vmatpush.msra.mxu2 %v1062_v27  ;;  %v370_v27 = vadd.f32 %v1980_v36, %v1920_v6  ;;  %v1997_v6 = vand.u32 4294901760, %v1007_v47 }
 0x1f1   :  { %v789_v12 = vand.u32 4294901760, %v788_v15  ;;  %1127 = vmatpush.msra.mxu3 %v1026_v18  ;;  %v1542_v15 = vld [vmem:[#allocation2 + $0x48] ss:$0 sm:$0xff] }
 0x1f2   :  { %1193 = vmatpush.msra.mxu1 %v1032_v39  ;;  %1104 = vmatpush.msra.mxu2 %v1068_v35  ;;  %v1010_v35 = vld [vmem:[#allocation2 + $0x150] sm:$0xff] }
 0x1f3   :  { %790 = vmatmul.f32.vlgmr.msra.gmra.mxu0 %v789_v12  ;;  %994 = vmatmul.f32.vlgmr.msrb.gmra.mxu1 %v785_v4  ;;  %v1991_v41 = vand.u32 4294901760, %v1010_v35 }
 0x1f4   :  { %1156 = vmatpush.msra.mxu0 %v1057_v23  ;;  %1107 = vmatpush.msra.mxu2 %v1074_v46  ;;  %v1995_v46 = vand.u32 4294901760, %v1008_v40 }
 0x1f5   :  { %1129 = vmatpush.msra.mxu3 %v1028_v17  ;;  %v2004_v57 = vsub.f32 %v1010_v35, %v1991_v41  ;;  %1370 = vmatpush.msrb.mxu1 %v1991_v41 }
 0x1f6   :  { %1160 = vmatpush.msra.mxu0 %v1063_v34 }
 0x1f7   :  { %1131 = vmatpush.msra.mxu3 %v1030_v28  ;;  %v415_v28 = vadd.f32 %v1977_v32, %v370_v27  ;;  %v1999_v32 = vand.u32 4294901760, %v1006_v50 }
 0x1f8   :  { %1164 = vmatpush.msra.mxu0 %v1069_v45 }
 0x1f9   :  { %1133 = vmatpush.msra.mxu3 %v1032_v39  ;;  %v488_v29 = vadd.f32 %v487_v63, %v415_v28  ;;  %v1009_v39 = vld [vmem:[#allocation2 + $0x148] sm:$0xff]  ;;  %v2010_v63 = vsub.f32 %v1008_v40, %v1995_v46 }
 0x1fa   :  { %1168 = vmatpush.msra.mxu0 %v1075_v51  ;;  %v1993_v45 = vand.u32 4294901760, %v1009_v39  ;;  %v1005_v51 = vld [vmem:[#allocation2 + $0x128] sm:$0xff] }
 0x1fb   :  { %965 = vmatmul.f32.vlgmr.msrb.gmra.mxu0 %v785_v4  ;;  %v529_v33 = vadd.f32 %v528_v58, %v488_v29  ;;  %v2001_v36 = vand.u32 4294901760, %v1005_v51 }
 0x1fc   :  { %v2007_v58 = vsub.f32 %v1009_v39, %v1993_v45  ;;  %1333 = vmatpush.msrb.mxu0 %v2004_v57  ;;  %1372 = vmatpush.msrb.mxu1 %v1993_v45 }
 0x1fe   :  { %1336 = vmatpush.msrb.mxu0 %v2007_v58  ;;  %1374 = vmatpush.msrb.mxu1 %v1995_v46 }
 0x200   :  { %1339 = vmatpush.msrb.mxu0 %v2010_v63  ;;  %1376 = vmatpush.msrb.mxu1 %v1997_v6 }
 0x202   :  { %1378 = vmatpush.msrb.mxu1 %v1999_v32 }
 0x204   :  { %1380 = vmatpush.msrb.mxu1 %v2001_v36 }
 0x268   :  { %v852_v1 = vpop.f32.mrf.mxu1 }
 0x270   :  { %v791_v5 = vpop.f32.mrf.mxu0  ;;  %v890_v14 = vpop.f32.mrf.mxu2 }
 0x271   :  { %v792_v7 = vadd.f32 %v1541_v0, %v791_v5  ;;  %v995_v31 = vpop.f32.mrf.mxu1  ;;  %v2013_v0 = vand.u32 4294901760, %v1004_v52  ;;  %v2017_v5 = vsub.f32 %v1007_v47, %v1997_v6 }
 0x272   :  { %v921_v21 = vpop.f32.mrf.mxu3 }
 0x273   :  { %v853_v10 = vadd.f32 %v852_v1, %v792_v7  ;;  %v2020_v7 = vsub.f32 %v1006_v50, %v1999_v32  ;;  %1342 = vmatpush.msrb.mxu0 %v2017_v5  ;;  %1382 = vmatpush.msrb.mxu1 %v2013_v0 }
 0x275   :  { %v891_v16 = vadd.f32 %v890_v14, %v853_v10  ;;  %v2023_v10 = vsub.f32 %v1005_v51, %v2001_v36  ;;  %1345 = vmatpush.msrb.mxu0 %v2020_v7 }
 0x277   :  { %v922_v25 = vadd.f32 %v921_v21, %v891_v16  ;;  %v1272_v16 = vand.u32 4294901760, %v2004_v57  ;;  %v1278_v21 = vand.u32 4294901760, %v2007_v58  ;;  %1348 = vmatpush.msrb.mxu0 %v2023_v10 }
 0x278   :  { %v966_v26 = vpop.f32.mrf.mxu0 }
 0x279   :  { %v967_v30 = vadd.f32 %v966_v26, %v922_v25  ;;  %v1284_v25 = vand.u32 4294901760, %v2010_v63  ;;  %v2032_v26 = vand.u32 4294901760, %v1003_v56 }
 0x27b   :  { %v996_v37 = vadd.f32 %v995_v31, %v967_v30  ;;  %v1290_v30 = vand.u32 4294901760, %v2017_v5  ;;  %v1296_v31 = vand.u32 4294901760, %v2020_v7  ;;  %1384 = vmatpush.msrb.mxu1 %v2032_v26 }
 0x27d   :  { %v1012_v38 = vsel %vm566_vm5, %v996_v37, 0  ;;  %1466 = vrot.lane.b32.xlu1 %v996_v37, %s1583_s0  ;;  %v2038_v37 = vsub.f32 %v1004_v52, %v2013_v0 }
 0x27e   :  { %v1034_v43 = vand.u32 4294901760, %v1012_v38 }
 0x27f   :  { %1351 = vmatpush.msrb.mxu0 %v2038_v37 }
 0x280   :  { %v1035_v44 = vsub.f32 %v1012_v38, %v1034_v43  ;;  %1080 = vmatmul.f32.vlgmr.msrb.gmra.mxu3 %v1034_v43  ;;  %1170 = vmatmul.f32.vlgmr.msra.gmra.mxu0 %v1034_v43 }
 0x281   :  { %1195 = vmatmul.f32.vlgmr.msra.gmra.mxu1 %v1034_v43  ;;  %v1273_v43 = vsub.f32 %v2004_v57, %v1272_v16 }
 0x282   :  { %v1036_v48 = vand.u32 4294901760, %v1035_v44 }
 0x284   :  { %v1037_v49 = vsub.f32 %v1035_v44, %v1036_v48 }
 0x286   :  { %v1038_v53 = vand.u32 4294901760, %v1037_v49  ;;  %v1274_v49 = vand.u32 4294901760, %v1273_v43 }
 0x288   :  { %1039 = vmatmul.f32.vlgmr.msrb.gmra.mxu2 %v1038_v53  ;;  %1137 = vmatmul.f32.vlgmr.msra.gmra.mxu3 %v1036_v48  ;;  %v1285_v48 = vsub.f32 %v2010_v63, %v1284_v25 }
 0x289   :  { %1238 = vmatpush.msrb.mxu2 %v1991_v41  ;;  %1275 = vmatpush.msrb.mxu3 %v1274_v49 }
 0x28b   :  { %1240 = vmatpush.msrb.mxu2 %v1993_v45 }
 0x28d   :  { %1242 = vmatpush.msrb.mxu2 %v1995_v46 }
 0x28f   :  { %1244 = vmatpush.msrb.mxu2 %v1997_v6 }
 0x290   :  { %1110 = vmatmul.f32.vlgmr.msra.gmra.mxu2 %v1035_v44  ;;  %v1279_v44 = vsub.f32 %v2007_v58, %v1278_v21 }
 0x291   :  { %1246 = vmatpush.msrb.mxu2 %v1999_v32 }
 0x292   :  { %v1280_v53 = vand.u32 4294901760, %v1279_v44 }
 0x293   :  { %1248 = vmatpush.msrb.mxu2 %v2001_v36 }
 0x294   :  { %1281 = vmatpush.msrb.mxu3 %v1280_v53 }
 0x295   :  { %1250 = vmatpush.msrb.mxu2 %v2013_v0 }
 0x297   :  { %1252 = vmatpush.msrb.mxu2 %v2032_v26 }
 0x299   :  { %1403 = vmatpush.msra.mxu2 %v1272_v16 }
 0x29b   :  { %1407 = vmatpush.msra.mxu2 %v1278_v21 }
 0x29d   :  { %1411 = vmatpush.msra.mxu2 %v1284_v25 }
 0x29f   :  { %1415 = vmatpush.msra.mxu2 %v1290_v30 }
 0x2a1   :  { %1419 = vmatpush.msra.mxu2 %v1296_v31 }
 0x2fd   :  { %v1171_v3 = vpop.f32.mrf.mxu0 }
 0x2fe   :  { %v1196_v8 = vpop.f32.mrf.mxu1 }
 0x303   :  { %v1081_v54 = vpop.f32.mrf.mxu3 }
 0x30b   :  { %v1040_v55 = vpop.f32.mrf.mxu2  ;;  %v1138_v62 = vpop.f32.mrf.mxu3 }
 0x30c   :  { %v1082_v59 = vadd.f32 %v1081_v54, %v1040_v55  ;;  %v1291_v54 = vsub.f32 %v2017_v5, %v1290_v30  ;;  %v1302_v55 = vand.u32 4294901760, %v2023_v10 }
 0x30e   :  { %1423 = vmatpush.msra.mxu2 %v1302_v55 }
 0x313   :  { %v1111_v60 = vpop.f32.mrf.mxu2 }
 0x314   :  { %v1112_v61 = vadd.f32 %v1111_v60, %v1082_v59  ;;  %v1313_v59 = vsub.f32 %v1003_v56, %v2032_v26  ;;  %v1286_v60 = vand.u32 4294901760, %v1285_v48 }
 0x316   :  { %v1139_v2 = vadd.f32 %v1138_v62, %v1112_v61  ;;  %v1297_v61 = vsub.f32 %v2020_v7, %v1296_v31  ;;  %v1308_v62 = vand.u32 4294901760, %v2038_v37  ;;  %1287 = vmatpush.msrb.mxu3 %v1286_v60  ;;  %1354 = vmatpush.msrb.mxu0 %v1313_v59 }
 0x318   :  { %v1172_v4 = vadd.f32 %v1171_v3, %v1139_v2  ;;  %v1292_v2 = vand.u32 4294901760, %v1291_v54  ;;  %v1303_v3 = vsub.f32 %v2023_v10, %v1302_v55  ;;  %1427 = vmatpush.msra.mxu2 %v1308_v62 }
 0x31a   :  { %v1197_v9 = vadd.f32 %v1196_v8, %v1172_v4  ;;  %v1314_v4 = vand.u32 4294901760, %v1313_v59  ;;  %v1298_v8 = vand.u32 4294901760, %v1297_v61  ;;  %1293 = vmatpush.msrb.mxu3 %v1292_v2 }
 0x31c   :  { %v1199_v12 = vmul.f32 2.0, %v1197_v9  ;;  %v1309_v9 = vsub.f32 %v2038_v37, %v1308_v62  ;;  %1299 = vmatpush.msrb.mxu3 %v1298_v8  ;;  %1431 = vmatpush.msra.mxu2 %v1314_v4 }
 0x31e   :  { %v1201_v13 = vsub.f32 %v1542_v15, %v1199_v12  ;;  %v1304_v15 = vand.u32 4294901760, %v1303_v3  ;;  %v1315_v12 = vsub.f32 %v1313_v59, %v1314_v4 }
 0x320   :  { %v1203_v18 = vsel %vm1202_vm7, %v1201_v13, inf  ;;  %1305 = vmatpush.msrb.mxu3 %v1304_v15 }
 0x321   :  { %1204 = vmin.xlane.f32.xlu2 %v1203_v18  ;;  %v1316_v18 = vand.u32 4294901760, %v1315_v12 }
 0x394   :  { %v1205_v19 = vpop.xlane.xlu2 %1204 }
 0x395   :  { %vm1206_vm8 = vcmp.le.f32.partialorder %v1201_v13, %v1205_v19  ;;  %v1310_v13 = vand.u32 4294901760, %v1309_v9  ;;  %v1470_v19 = vrot.slane %v1922_v42, 4 }
 0x396   :  { %v1207_v11 = vsel %vm1206_vm8, %v1821_v20, 64 }
 0x397   :  { %v1208_v17 = vsel %vm1202_vm7, %v1207_v11, 2147483647  ;;  %1311 = vmatpush.msrb.mxu3 %v1310_v13 }
 0x398   :  { %v1210_v22 = vshra.s32 %v1208_v17, 16  ;;  %v1209_v34 = vand.u32 65535, %v1208_v17 }
 0x399   :  { %1317 = vmatpush.msrb.mxu3 %v1316_v18 }
 0x39a   :  { %v1212_v23 = vcvt.s32.f32 %v1210_v22  ;;  %v1211_v1 = vcvt.s32.f32 %v1209_v34 }
 0x39b   :  { %1446 = vmatpush.msra.mxu3 %v1991_v41 }
 0x39c   :  { %1213 = vmin.xlane.f32.xlu0 %v1212_v23 }
 0x39d   :  { %1448 = vmatpush.msra.mxu3 %v1993_v45 }
 0x39f   :  { %1450 = vmatpush.msra.mxu3 %v1995_v46 }
 0x3a1   :  { %1452 = vmatpush.msra.mxu3 %v1997_v6 }
 0x3a3   :  { %1454 = vmatpush.msra.mxu3 %v1999_v32  ;;  %v1467_v32 = vpop.permute.xlu1 %1466 }
 0x3a5   :  { %1456 = vmatpush.msra.mxu3 %v2001_v36 }
 0x3a7   :  { %1458 = vmatpush.msra.mxu3 %v2013_v0 }
 0x3a9   :  { %1460 = vmatpush.msra.mxu3 %v2032_v26 }
 0x3b0   :  { %1475 = vrot.lane.b32.xlu0 %v529_v33, %s1584_s19 }
 0x40f   :  { %v2025_v14 = vpop.xlane.xlu0 %1213 }
 0x410   :  { %vm1215_vm9 = vcmp.eq.f32.partialorder %v1212_v23, %v2025_v14  ;;  %v1220_v11 = vcvt.f32.s32 %v2025_v14 }
 0x411   :  { %v1216_v38 = vsel %vm1215_vm9, %v1211_v1, inf }
 0x412   :  { %1217 = vmin.xlane.f32.xlu2 %v1216_v38  ;;  %v1221_v17 = vshll.u32 %v1220_v11, 16 }
 0x422   :  { %v1476_v56 = vpop.permute.xlu0 %1475 }
 0x42a   :  { %1471 = vrot.lane.b32.xlu2 %v1470_v19, %s1585_s20 }
 0x485   :  { %v1218_v42 = vpop.xlane.xlu2 %1217 }
 0x486   :  { %v1219_v22 = vcvt.f32.s32 %v1218_v42 }
 0x488   :  { %v1222_v23 = vadd.s32 %v1221_v17, %v1219_v22 }
 0x48a   :  { %vm1223_vm10 = vcmp.eq.s32.totalorder %v1821_v20, %v1222_v23 }
 0x48b   :  { %v1504_v27 = vsel %vm1223_vm10, 1.0, %v1582_v24 }
 0x48c   :  { %1505 = vmatmul.msk.f32.vlgmr.msrb.gmra.mxu3 %vm757_vm6, %v1504_v27  ;;  %v1227_v28 = vsel %vm757_vm6, %v1504_v27, 0 }
 0x48d   :  { %v1254_v29 = vsub.f32 %v1227_v28, %v1227_v28  ;;  %v1472_v36 = vpop.permute.xlu2 %1471 }
 0x48f   :  { %1357 = vmatmul.f32.vlgmr.msrb.gmra.mxu0 %v1254_v29  ;;  %v1255_v33 = vand.u32 4294901760, %v1254_v29 }
 0x491   :  { %1388 = vmatmul.f32.vlgmr.msrb.gmra.mxu1 %v1255_v33  ;;  %v1256_v34 = vsub.f32 %v1254_v29, %v1255_v33 }
 0x493   :  { %v1257_v35 = vand.u32 4294901760, %v1256_v34 }
 0x494   :  { %1507 = vmatmul.msk.f32.vlgmr.msra.gmra.mxu3 %vm757_vm6, %v1504_v27 }
 0x495   :  { %1258 = vmatmul.f32.vlgmr.msrb.gmra.mxu2 %v1257_v35 }
 0x49d   :  { %1506 = vmatmul.msk.f32.vlgmr.msra.gmra.mxu2 %vm757_vm6, %v1504_v27 }
 0x50c   :  { %v1358_v41 = vpop.f32.mrf.mxu0 }
 0x50e   :  { %v1389_v45 = vpop.f32.mrf.mxu1 }
 0x50f   :  { %v1320_v39 = vpop.f32.mrf.mxu3 }
 0x517   :  { %v1463_v51 = vpop.f32.mrf.mxu3 }
 0x518   :  { %v1259_v40 = vpop.f32.mrf.mxu2 }
 0x519   :  { %v1321_v20 = vadd.f32 %v1320_v39, %v1259_v40 }
 0x51b   :  { %v1359_v24 = vadd.f32 %v1358_v41, %v1321_v20 }
 0x51d   :  { %v1390_v46 = vadd.f32 %v1389_v45, %v1359_v24 }
 0x520   :  { %v1434_v47 = vpop.f32.mrf.mxu2 }
 0x521   :  { %v1435_v50 = vadd.f32 %v1434_v47, %v1390_v46 }
 0x523   :  { %v1464_v6 = vadd.f32 %v1463_v51, %v1435_v50 }
 0x525   :  { %v1478_v52 = vsel %vm566_vm5, %v1464_v6, %v1467_v32 }
 0x526   :  { %v1479_v57 = vsel %vm757_vm6, %v1478_v52, %v1472_v36 }
 0x527   :  { %v1481_v58 = vsel %vm1480_vm11, %v1479_v57, %v1476_v56 }
 0x528   :  { %1482 = vst [vmem:[%s2092_s2] sm:$0xf] %v1481_v58 }
 0x529   :  { %1487 = vsyncpa [#allocation3], 1 }

</bundles_post_ra>
